<compile_context>
chip_gen: v7x
topology: tpu7x:2x2x1
jax: 0.10.0
libtpu: 0.0.40
codegen_flags: <defaults>
</compile_context>

<pallas_src>
import functools

import jax
import jax.numpy as jnp
from jax.experimental import pallas as pl
from jax.experimental.pallas import tpu as pltpu


LAYER_DIMS = [
    # encoder
    (784, 128), (128, 64), (64, 12), (12, 3),
    # decoder
    (3, 12), (12, 64), (64, 128), (128, 784),
]

IN_FEATURES = 784
MAX_TB = 4096  # v7x (64 MiB VMEM) safety ceiling for the batch tile


def _round_up(n, m):
    return ((n + m - 1) // m) * m


def autoencoder_kernel(x_ref,
                       w1, b1, w2, b2, w3, b3, w4, b4,
                       w5, b5, w6, b6, w7, b7, w8, b8,
                       enc_ref, dec_ref):
    x = x_ref[...]  # (TB, 784) bf16

    def lin_tanh(h, w_r, b_r):
        # bf16 x bf16 single-pass MXU matmul, f32 accumulation, bf16 tanh (EUP).
        acc = jnp.dot(h, w_r[...], preferred_element_type=jnp.float32) + b_r[...]
        return jnp.tanh(acc.astype(jnp.bfloat16))

    # ---- encoder: (Linear + Tanh) x3, final Linear (no activation) ----
    h = lin_tanh(x, w1, b1)
    h = lin_tanh(h, w2, b2)
    h = lin_tanh(h, w3, b3)
    enc = jnp.dot(h, w4[...], preferred_element_type=jnp.float32) + b4[...]
    enc_ref[...] = enc.astype(enc_ref.dtype)          # (TB, 3) f32

    # ---- decoder: (Linear + Tanh) x3, final Linear + Sigmoid ----
    d = lin_tanh(enc.astype(jnp.bfloat16), w5, b5)
    d = lin_tanh(d, w6, b6)
    d = lin_tanh(d, w7, b7)
    logits = jnp.dot(d, w8[...], preferred_element_type=jnp.float32) + b8[...]
    # sigmoid(x) == 0.5 * (tanh(0.5 * x) + 1): one EUP transcendental per elem.
    dec = jnp.tanh((0.5 * logits).astype(jnp.bfloat16)) * 0.5 + 0.5
    dec_ref[...] = dec.astype(dec_ref.dtype)          # (TB, 784) bf16


def init_params(key):
    """Deterministic init mirroring PyTorch nn.Linear defaults:
    W, b ~ U(-1/sqrt(fan_in), 1/sqrt(fan_in)).  Weights stored as (in, out)."""
    params = []
    for (fan_in, fan_out) in LAYER_DIMS:
        key, kw, kb = jax.random.split(key, 3)
        bound = 1.0 / jnp.sqrt(jnp.float32(fan_in))
        w = jax.random.uniform(kw, (fan_in, fan_out), jnp.float32, -bound, bound)
        b = jax.random.uniform(kb, (1, fan_out), jnp.float32, -bound, bound)
        params.append((w, b))
    return params


def _vmem_limit_bytes(tb):
    # Pallas double-buffers every input spec, including the constant-index
    # resident weights/biases -> count them twice.
    weight_bytes = 2 * sum(fi * fo * 2 + fo * 4 for (fi, fo) in LAYER_DIMS)
    # Double-buffered batch-facing blocks: x (bf16), decoded (bf16), encoded (f32).
    io_bytes = 2 * (tb * IN_FEATURES * 2 + tb * IN_FEATURES * 2 + tb * 3 * 4)
    # Generous allowance for in-kernel intermediates (f32 logits + activations).
    act_bytes = tb * (IN_FEATURES * 4 + IN_FEATURES * 2
                      + 2 * (128 + 64 + 12 + 3) * 4)
    total = weight_bytes + io_bytes + act_bytes
    # 2x headroom for compiler scratch; stay well under v7x's 64 MiB VMEM.
    return int(min(max(2 * total, 16 * 1024 * 1024), 48 * 1024 * 1024))


def _cost_estimate(batch):
    flops = 2 * sum(fi * fo for (fi, fo) in LAYER_DIMS) * batch
    # tanh in the hidden layers + one tanh per decoded element (sigmoid identity)
    transcendentals = (128 + 64 + 12 + 12 + 64 + 128 + 784) * batch
    weight_bytes = sum(fi * fo * 2 + fo * 4 for (fi, fo) in LAYER_DIMS)
    bytes_accessed = batch * (IN_FEATURES * 2 + IN_FEATURES * 2 + 3 * 4) + weight_bytes
    return pl.CostEstimate(flops=int(flops),
                           transcendentals=int(transcendentals),
                           bytes_accessed=int(bytes_accessed))


@functools.partial(jax.jit, static_argnames=("tb",))
def autoencoder_forward(x, params, tb=1024):
    """x: (B, 784) float.  Returns (encoded (B,3) f32, decoded (B,784) bf16)."""
    B = x.shape[0]

    # --- batch tile selection ---
    # Multiple of 16 (bf16 sublane packing), never larger than the padded batch,
    # at least 2 grid steps when the batch allows (pipelining + v7x's 2 TCs),
    # hard cap for v7x VMEM.
    tb = max(16, (int(tb) // 16) * 16)
    B16 = _round_up(B, 16)
    tb = min(tb, B16, MAX_TB)
    if B16 >= 32 and tb > B16 // 2:
        tb = max(16, _round_up(B16 // 2, 16))

    B_pad = _round_up(B, tb)

    x = x.astype(jnp.bfloat16)
    if B_pad != B:
        x = jnp.pad(x, ((0, B_pad - B), (0, 0)))

    # Flatten params (all weights bf16, biases f32) and build specs.
    flat_inputs = [x]
    in_specs = [pl.BlockSpec((tb, IN_FEATURES), lambda i: (i, 0))]
    for li, (w, b) in enumerate(params):
        fi, fo = LAYER_DIMS[li]
        flat_inputs.append(w.astype(jnp.bfloat16))
        flat_inputs.append(b.astype(jnp.float32))
        # Resident weights/biases: constant block index -> DMA'd once.
        in_specs.append(pl.BlockSpec((fi, fo), lambda i: (0, 0)))
        in_specs.append(pl.BlockSpec((1, fo), lambda i: (0, 0)))

    out_shape = (
        jax.ShapeDtypeStruct((B_pad, 3), jnp.float32),             # encoded
        jax.ShapeDtypeStruct((B_pad, IN_FEATURES), jnp.bfloat16),  # decoded
    )
    out_specs = (
        pl.BlockSpec((tb, 3), lambda i: (i, 0)),
        pl.BlockSpec((tb, IN_FEATURES), lambda i: (i, 0)),  # lane-dense 784-wide
    )

    grid = (pl.cdiv(B_pad, tb),)

    encoded, decoded = pl.pallas_call(
        autoencoder_kernel,
        out_shape=out_shape,
        grid=grid,
        in_specs=in_specs,
        out_specs=out_specs,
        compiler_params=pltpu.CompilerParams(
            dimension_semantics=("parallel",),
            vmem_limit_bytes=_vmem_limit_bytes(tb),
        ),
        cost_estimate=_cost_estimate(B_pad),
    )(*flat_inputs)

    return encoded[:B], decoded[:B]


def reference_forward(x, params):
    """Pure-JAX reference with the same dtype plumbing (bf16 weights/acts,
    f32 accumulation) but the 'true' jax.nn.sigmoid for the final activation,
    so the tanh-identity used in the kernel is validated too."""
    ws = [w.astype(jnp.bfloat16) for (w, _) in params]
    bs = [b.astype(jnp.float32) for (_, b) in params]
    x = x.astype(jnp.bfloat16)

    def lin_tanh(h, w, b):
        acc = jnp.dot(h, w, preferred_element_type=jnp.float32) + b
        return jnp.tanh(acc.astype(jnp.bfloat16))

    h = lin_tanh(x, ws[0], bs[0])
    h = lin_tanh(h, ws[1], bs[1])
    h = lin_tanh(h, ws[2], bs[2])
    enc = jnp.dot(h, ws[3], preferred_element_type=jnp.float32) + bs[3]

    d = lin_tanh(enc.astype(jnp.bfloat16), ws[4], bs[4])
    d = lin_tanh(d, ws[5], bs[5])
    d = lin_tanh(d, ws[6], bs[6])
    logits = jnp.dot(d, ws[7], preferred_element_type=jnp.float32) + bs[7]
    dec = jax.nn.sigmoid(logits)   # f32 sigmoid
    return enc, dec


if __name__ == "__main__":
    key = jax.random.PRNGKey(0)
    key, kx = jax.random.split(key)

    # Small, non-tile-aligned batch to exercise the grid + padding path:
    # B=37, tb=16 -> padded to 48, grid=(3,).
    B = 37
    x = jax.random.uniform(kx, (B, 28 * 28), jnp.float32)  # MNIST-like flat input

    params = init_params(key)

    encoded, decoded = autoencoder_forward(x, params, tb=16)
    jax.block_until_ready((encoded, decoded))

    # sanity check against pure-JAX reference
    enc_ref, dec_ref = reference_forward(x, params)
    assert encoded.shape == (B, 3) and decoded.shape == (B, 28 * 28)
    assert jnp.allclose(encoded, enc_ref, atol=1e-2, rtol=1e-2), (
        float(jnp.max(jnp.abs(encoded - enc_ref))))
    assert jnp.allclose(decoded.astype(jnp.float32), dec_ref,
                        atol=3e-2, rtol=3e-2), (
        float(jnp.max(jnp.abs(decoded.astype(jnp.float32) - dec_ref))))

    print("KERNEL_OK")
</pallas_src>

<mosaic_0001>
module attributes {stable_mosaic.version = 11 : i64} {
  func.func @autoencoder_kernel(%arg0: i32, %arg1: memref<16x784xbf16, #tpu.memory_space<vmem>>, %arg2: memref<784x128xbf16, #tpu.memory_space<vmem>>, %arg3: memref<1x128xf32, #tpu.memory_space<vmem>>, %arg4: memref<128x64xbf16, #tpu.memory_space<vmem>>, %arg5: memref<1x64xf32, #tpu.memory_space<vmem>>, %arg6: memref<64x12xbf16, #tpu.memory_space<vmem>>, %arg7: memref<1x12xf32, #tpu.memory_space<vmem>>, %arg8: memref<12x3xbf16, #tpu.memory_space<vmem>>, %arg9: memref<1x3xf32, #tpu.memory_space<vmem>>, %arg10: memref<3x12xbf16, #tpu.memory_space<vmem>>, %arg11: memref<1x12xf32, #tpu.memory_space<vmem>>, %arg12: memref<12x64xbf16, #tpu.memory_space<vmem>>, %arg13: memref<1x64xf32, #tpu.memory_space<vmem>>, %arg14: memref<64x128xbf16, #tpu.memory_space<vmem>>, %arg15: memref<1x128xf32, #tpu.memory_space<vmem>>, %arg16: memref<128x784xbf16, #tpu.memory_space<vmem>>, %arg17: memref<1x784xf32, #tpu.memory_space<vmem>>, %arg18: memref<16x3xf32, #tpu.memory_space<vmem>>, %arg19: memref<16x784xbf16, #tpu.memory_space<vmem>>) attributes {dimension_semantics = [#tpu.dimension_semantics<parallel>], iteration_bounds = array<i64: 3>, scalar_prefetch = 0 : i64, scratch_operands = 0 : i64, tpu.core_type = #tpu.core_type<tc>, window_params = [{transform_indices = @transform_0, window_bounds = array<i64: 16, 784>}, {pipeline_mode = #tpu.pipeline_mode<synchronous>, transform_indices = @transform_1, window_bounds = array<i64: 784, 128>}, {pipeline_mode = #tpu.pipeline_mode<synchronous>, transform_indices = @transform_2, window_bounds = array<i64: 1, 128>}, {pipeline_mode = #tpu.pipeline_mode<synchronous>, transform_indices = @transform_3, window_bounds = array<i64: 128, 64>}, {pipeline_mode = #tpu.pipeline_mode<synchronous>, transform_indices = @transform_4, window_bounds = array<i64: 1, 64>}, {pipeline_mode = #tpu.pipeline_mode<synchronous>, transform_indices = @transform_5, window_bounds = array<i64: 64, 12>}, {pipeline_mode = #tpu.pipeline_mode<synchronous>, transform_indices = @transform_6, window_bounds = array<i64: 1, 12>}, {pipeline_mode = #tpu.pipeline_mode<synchronous>, transform_indices = @transform_7, window_bounds = array<i64: 12, 3>}, {pipeline_mode = #tpu.pipeline_mode<synchronous>, transform_indices = @transform_8, window_bounds = array<i64: 1, 3>}, {pipeline_mode = #tpu.pipeline_mode<synchronous>, transform_indices = @transform_9, window_bounds = array<i64: 3, 12>}, {pipeline_mode = #tpu.pipeline_mode<synchronous>, transform_indices = @transform_10, window_bounds = array<i64: 1, 12>}, {pipeline_mode = #tpu.pipeline_mode<synchronous>, transform_indices = @transform_11, window_bounds = array<i64: 12, 64>}, {pipeline_mode = #tpu.pipeline_mode<synchronous>, transform_indices = @transform_12, window_bounds = array<i64: 1, 64>}, {pipeline_mode = #tpu.pipeline_mode<synchronous>, transform_indices = @transform_13, window_bounds = array<i64: 64, 128>}, {pipeline_mode = #tpu.pipeline_mode<synchronous>, transform_indices = @transform_14, window_bounds = array<i64: 1, 128>}, {pipeline_mode = #tpu.pipeline_mode<synchronous>, transform_indices = @transform_15, window_bounds = array<i64: 128, 784>}, {pipeline_mode = #tpu.pipeline_mode<synchronous>, transform_indices = @transform_16, window_bounds = array<i64: 1, 784>}, {transform_indices = @transform_17, window_bounds = array<i64: 16, 3>}, {transform_indices = @transform_18, window_bounds = array<i64: 16, 784>}]} {
    %c0 = arith.constant 0 : index
    %c0_0 = arith.constant 0 : index
    %0 = vector.load %arg1[%c0, %c0_0] : memref<16x784xbf16, #tpu.memory_space<vmem>>, vector<16x784xbf16>
    %c0_1 = arith.constant 0 : index
    %c0_2 = arith.constant 0 : index
    %1 = vector.load %arg2[%c0_1, %c0_2] : memref<784x128xbf16, #tpu.memory_space<vmem>>, vector<784x128xbf16>
    %cst = arith.constant dense<0.000000e+00> : vector<16x128xf32>
    %2 = tpu.matmul %0, %1, %cst {dimension_numbers = #tpu.dot_dimension_numbers<[1], [0], [0], [1], [0, 0, 1, 1], [], []>} : vector<16x784xbf16>, vector<784x128xbf16>, vector<16x128xf32> -> vector<16x128xf32>
    %c0_3 = arith.constant 0 : index
    %c0_4 = arith.constant 0 : index
    %3 = vector.load %arg3[%c0_3, %c0_4] : memref<1x128xf32, #tpu.memory_space<vmem>>, vector<1x128xf32>
    %4 = vector.broadcast %3 : vector<1x128xf32> to vector<16x128xf32>
    %5 = arith.addf %2, %4 : vector<16x128xf32>
    %6 = arith.truncf %5 : vector<16x128xf32> to vector<16x128xbf16>
    %7 = math.tanh %6 : vector<16x128xbf16>
    %c0_5 = arith.constant 0 : index
    %c0_6 = arith.constant 0 : index
    %8 = vector.load %arg4[%c0_5, %c0_6] : memref<128x64xbf16, #tpu.memory_space<vmem>>, vector<128x64xbf16>
    %cst_7 = arith.constant dense<0.000000e+00> : vector<16x64xf32>
    %9 = tpu.matmul %7, %8, %cst_7 {dimension_numbers = #tpu.dot_dimension_numbers<[1], [0], [0], [1], [0, 0, 1, 1], [], []>} : vector<16x128xbf16>, vector<128x64xbf16>, vector<16x64xf32> -> vector<16x64xf32>
    %c0_8 = arith.constant 0 : index
    %c0_9 = arith.constant 0 : index
    %10 = vector.load %arg5[%c0_8, %c0_9] : memref<1x64xf32, #tpu.memory_space<vmem>>, vector<1x64xf32>
    %11 = vector.broadcast %10 : vector<1x64xf32> to vector<16x64xf32>
    %12 = arith.addf %9, %11 : vector<16x64xf32>
    %13 = arith.truncf %12 : vector<16x64xf32> to vector<16x64xbf16>
    %14 = math.tanh %13 : vector<16x64xbf16>
    %c0_10 = arith.constant 0 : index
    %c0_11 = arith.constant 0 : index
    %15 = vector.load %arg6[%c0_10, %c0_11] : memref<64x12xbf16, #tpu.memory_space<vmem>>, vector<64x12xbf16>
    %cst_12 = arith.constant dense<0.000000e+00> : vector<16x12xf32>
    %16 = tpu.matmul %14, %15, %cst_12 {dimension_numbers = #tpu.dot_dimension_numbers<[1], [0], [0], [1], [0, 0, 1, 1], [], []>} : vector<16x64xbf16>, vector<64x12xbf16>, vector<16x12xf32> -> vector<16x12xf32>
    %c0_13 = arith.constant 0 : index
    %c0_14 = arith.constant 0 : index
    %17 = vector.load %arg7[%c0_13, %c0_14] : memref<1x12xf32, #tpu.memory_space<vmem>>, vector<1x12xf32>
    %18 = vector.broadcast %17 : vector<1x12xf32> to vector<16x12xf32>
    %19 = arith.addf %16, %18 : vector<16x12xf32>
    %20 = arith.truncf %19 : vector<16x12xf32> to vector<16x12xbf16>
    %21 = math.tanh %20 : vector<16x12xbf16>
    %c0_15 = arith.constant 0 : index
    %c0_16 = arith.constant 0 : index
    %22 = vector.load %arg8[%c0_15, %c0_16] : memref<12x3xbf16, #tpu.memory_space<vmem>>, vector<12x3xbf16>
    %cst_17 = arith.constant dense<0.000000e+00> : vector<16x3xf32>
    %23 = tpu.matmul %21, %22, %cst_17 {dimension_numbers = #tpu.dot_dimension_numbers<[1], [0], [0], [1], [0, 0, 1, 1], [], []>} : vector<16x12xbf16>, vector<12x3xbf16>, vector<16x3xf32> -> vector<16x3xf32>
    %c0_18 = arith.constant 0 : index
    %c0_19 = arith.constant 0 : index
    %24 = vector.load %arg9[%c0_18, %c0_19] : memref<1x3xf32, #tpu.memory_space<vmem>>, vector<1x3xf32>
    %25 = vector.broadcast %24 : vector<1x3xf32> to vector<16x3xf32>
    %26 = arith.addf %23, %25 : vector<16x3xf32>
    %c0_20 = arith.constant 0 : index
    %c0_21 = arith.constant 0 : index
    %27 = vector.load %arg18[%c0_20, %c0_21] : memref<16x3xf32, #tpu.memory_space<vmem>>, vector<16x3xf32>
    tpu.vector_store %arg18[%c0_20, %c0_21], %26 {strides = array<i32>} : memref<16x3xf32, #tpu.memory_space<vmem>>, vector<16x3xf32>,
    %28 = arith.truncf %26 : vector<16x3xf32> to vector<16x3xbf16>
    %c0_22 = arith.constant 0 : index
    %c0_23 = arith.constant 0 : index
    %29 = vector.load %arg10[%c0_22, %c0_23] : memref<3x12xbf16, #tpu.memory_space<vmem>>, vector<3x12xbf16>
    %cst_24 = arith.constant dense<0.000000e+00> : vector<16x12xf32>
    %30 = tpu.matmul %28, %29, %cst_24 {dimension_numbers = #tpu.dot_dimension_numbers<[1], [0], [0], [1], [0, 0, 1, 1], [], []>} : vector<16x3xbf16>, vector<3x12xbf16>, vector<16x12xf32> -> vector<16x12xf32>
    %c0_25 = arith.constant 0 : index
    %c0_26 = arith.constant 0 : index
    %31 = vector.load %arg11[%c0_25, %c0_26] : memref<1x12xf32, #tpu.memory_space<vmem>>, vector<1x12xf32>
    %32 = vector.broadcast %31 : vector<1x12xf32> to vector<16x12xf32>
    %33 = arith.addf %30, %32 : vector<16x12xf32>
    %34 = arith.truncf %33 : vector<16x12xf32> to vector<16x12xbf16>
    %35 = math.tanh %34 : vector<16x12xbf16>
    %c0_27 = arith.constant 0 : index
    %c0_28 = arith.constant 0 : index
    %36 = vector.load %arg12[%c0_27, %c0_28] : memref<12x64xbf16, #tpu.memory_space<vmem>>, vector<12x64xbf16>
    %cst_29 = arith.constant dense<0.000000e+00> : vector<16x64xf32>
    %37 = tpu.matmul %35, %36, %cst_29 {dimension_numbers = #tpu.dot_dimension_numbers<[1], [0], [0], [1], [0, 0, 1, 1], [], []>} : vector<16x12xbf16>, vector<12x64xbf16>, vector<16x64xf32> -> vector<16x64xf32>
    %c0_30 = arith.constant 0 : index
    %c0_31 = arith.constant 0 : index
    %38 = vector.load %arg13[%c0_30, %c0_31] : memref<1x64xf32, #tpu.memory_space<vmem>>, vector<1x64xf32>
    %39 = vector.broadcast %38 : vector<1x64xf32> to vector<16x64xf32>
    %40 = arith.addf %37, %39 : vector<16x64xf32>
    %41 = arith.truncf %40 : vector<16x64xf32> to vector<16x64xbf16>
    %42 = math.tanh %41 : vector<16x64xbf16>
    %c0_32 = arith.constant 0 : index
    %c0_33 = arith.constant 0 : index
    %43 = vector.load %arg14[%c0_32, %c0_33] : memref<64x128xbf16, #tpu.memory_space<vmem>>, vector<64x128xbf16>
    %cst_34 = arith.constant dense<0.000000e+00> : vector<16x128xf32>
    %44 = tpu.matmul %42, %43, %cst_34 {dimension_numbers = #tpu.dot_dimension_numbers<[1], [0], [0], [1], [0, 0, 1, 1], [], []>} : vector<16x64xbf16>, vector<64x128xbf16>, vector<16x128xf32> -> vector<16x128xf32>
    %c0_35 = arith.constant 0 : index
    %c0_36 = arith.constant 0 : index
    %45 = vector.load %arg15[%c0_35, %c0_36] : memref<1x128xf32, #tpu.memory_space<vmem>>, vector<1x128xf32>
    %46 = vector.broadcast %45 : vector<1x128xf32> to vector<16x128xf32>
    %47 = arith.addf %44, %46 : vector<16x128xf32>
    %48 = arith.truncf %47 : vector<16x128xf32> to vector<16x128xbf16>
    %49 = math.tanh %48 : vector<16x128xbf16>
    %c0_37 = arith.constant 0 : index
    %c0_38 = arith.constant 0 : index
    %50 = vector.load %arg16[%c0_37, %c0_38] : memref<128x784xbf16, #tpu.memory_space<vmem>>, vector<128x784xbf16>
    %cst_39 = arith.constant dense<0.000000e+00> : vector<16x784xf32>
    %51 = tpu.matmul %49, %50, %cst_39 {dimension_numbers = #tpu.dot_dimension_numbers<[1], [0], [0], [1], [0, 0, 1, 1], [], []>} : vector<16x128xbf16>, vector<128x784xbf16>, vector<16x784xf32> -> vector<16x784xf32>
    %c0_40 = arith.constant 0 : index
    %c0_41 = arith.constant 0 : index
    %52 = vector.load %arg17[%c0_40, %c0_41] : memref<1x784xf32, #tpu.memory_space<vmem>>, vector<1x784xf32>
    %53 = vector.broadcast %52 : vector<1x784xf32> to vector<16x784xf32>
    %54 = arith.addf %51, %53 : vector<16x784xf32>
    %cst_42 = arith.constant 5.000000e-01 : f32
    %55 = vector.broadcast %cst_42 : f32 to vector<16x784xf32>
    %56 = arith.mulf %55, %54 : vector<16x784xf32>
    %57 = arith.truncf %56 : vector<16x784xf32> to vector<16x784xbf16>
    %58 = math.tanh %57 : vector<16x784xbf16>
    %cst_43 = arith.constant 5.000000e-01 : bf16
    %59 = vector.broadcast %cst_43 : bf16 to vector<16x784xbf16>
    %60 = arith.mulf %58, %59 : vector<16x784xbf16>
    %cst_44 = arith.constant 5.000000e-01 : bf16
    %61 = vector.broadcast %cst_44 : bf16 to vector<16x784xbf16>
    %62 = arith.addf %60, %61 : vector<16x784xbf16>
    %c0_45 = arith.constant 0 : index
    %c0_46 = arith.constant 0 : index
    %63 = vector.load %arg19[%c0_45, %c0_46] : memref<16x784xbf16, #tpu.memory_space<vmem>>, vector<16x784xbf16>
    tpu.vector_store %arg19[%c0_45, %c0_46], %62 {strides = array<i32>} : memref<16x784xbf16, #tpu.memory_space<vmem>>, vector<16x784xbf16>,
    return
  }
  func.func @transform_0(%arg0: i32) -> (i32, i32) {
    %c0_i32 = arith.constant 0 : i32
    %c0_i32_0 = arith.constant 0 : i32
    return %arg0, %c0_i32 : i32, i32
  }
  func.func @transform_1(%arg0: i32) -> (i32, i32) {
    %c0_i32 = arith.constant 0 : i32
    %c0_i32_0 = arith.constant 0 : i32
    %c0_i32_1 = arith.constant 0 : i32
    return %c0_i32, %c0_i32_0 : i32, i32
  }
  func.func @transform_2(%arg0: i32) -> (i32, i32) {
    %c0_i32 = arith.constant 0 : i32
    %c0_i32_0 = arith.constant 0 : i32
    %c0_i32_1 = arith.constant 0 : i32
    return %c0_i32, %c0_i32_0 : i32, i32
  }
  func.func @transform_3(%arg0: i32) -> (i32, i32) {
    %c0_i32 = arith.constant 0 : i32
    %c0_i32_0 = arith.constant 0 : i32
    %c0_i32_1 = arith.constant 0 : i32
    return %c0_i32, %c0_i32_0 : i32, i32
  }
  func.func @transform_4(%arg0: i32) -> (i32, i32) {
    %c0_i32 = arith.constant 0 : i32
    %c0_i32_0 = arith.constant 0 : i32
    %c0_i32_1 = arith.constant 0 : i32
    return %c0_i32, %c0_i32_0 : i32, i32
  }
  func.func @transform_5(%arg0: i32) -> (i32, i32) {
    %c0_i32 = arith.constant 0 : i32
    %c0_i32_0 = arith.constant 0 : i32
    %c0_i32_1 = arith.constant 0 : i32
    return %c0_i32, %c0_i32_0 : i32, i32
  }
  func.func @transform_6(%arg0: i32) -> (i32, i32) {
    %c0_i32 = arith.constant 0 : i32
    %c0_i32_0 = arith.constant 0 : i32
    %c0_i32_1 = arith.constant 0 : i32
    return %c0_i32, %c0_i32_0 : i32, i32
  }
  func.func @transform_7(%arg0: i32) -> (i32, i32) {
    %c0_i32 = arith.constant 0 : i32
    %c0_i32_0 = arith.constant 0 : i32
    %c0_i32_1 = arith.constant 0 : i32
    return %c0_i32, %c0_i32_0 : i32, i32
  }
  func.func @transform_8(%arg0: i32) -> (i32, i32) {
    %c0_i32 = arith.constant 0 : i32
    %c0_i32_0 = arith.constant 0 : i32
    %c0_i32_1 = arith.constant 0 : i32
    return %c0_i32, %c0_i32_0 : i32, i32
  }
  func.func @transform_9(%arg0: i32) -> (i32, i32) {
    %c0_i32 = arith.constant 0 : i32
    %c0_i32_0 = arith.constant 0 : i32
    %c0_i32_1 = arith.constant 0 : i32
    return %c0_i32, %c0_i32_0 : i32, i32
  }
  func.func @transform_10(%arg0: i32) -> (i32, i32) {
    %c0_i32 = arith.constant 0 : i32
    %c0_i32_0 = arith.constant 0 : i32
    %c0_i32_1 = arith.constant 0 : i32
    return %c0_i32, %c0_i32_0 : i32, i32
  }
  func.func @transform_11(%arg0: i32) -> (i32, i32) {
    %c0_i32 = arith.constant 0 : i32
    %c0_i32_0 = arith.constant 0 : i32
    %c0_i32_1 = arith.constant 0 : i32
    return %c0_i32, %c0_i32_0 : i32, i32
  }
  func.func @transform_12(%arg0: i32) -> (i32, i32) {
    %c0_i32 = arith.constant 0 : i32
    %c0_i32_0 = arith.constant 0 : i32
    %c0_i32_1 = arith.constant 0 : i32
    return %c0_i32, %c0_i32_0 : i32, i32
  }
  func.func @transform_13(%arg0: i32) -> (i32, i32) {
    %c0_i32 = arith.constant 0 : i32
    %c0_i32_0 = arith.constant 0 : i32
    %c0_i32_1 = arith.constant 0 : i32
    return %c0_i32, %c0_i32_0 : i32, i32
  }
  func.func @transform_14(%arg0: i32) -> (i32, i32) {
    %c0_i32 = arith.constant 0 : i32
    %c0_i32_0 = arith.constant 0 : i32
    %c0_i32_1 = arith.constant 0 : i32
    return %c0_i32, %c0_i32_0 : i32, i32
  }
  func.func @transform_15(%arg0: i32) -> (i32, i32) {
    %c0_i32 = arith.constant 0 : i32
    %c0_i32_0 = arith.constant 0 : i32
    %c0_i32_1 = arith.constant 0 : i32
    return %c0_i32, %c0_i32_0 : i32, i32
  }
  func.func @transform_16(%arg0: i32) -> (i32, i32) {
    %c0_i32 = arith.constant 0 : i32
    %c0_i32_0 = arith.constant 0 : i32
    %c0_i32_1 = arith.constant 0 : i32
    return %c0_i32, %c0_i32_0 : i32, i32
  }
  func.func @transform_17(%arg0: i32) -> (i32, i32) {
    %c0_i32 = arith.constant 0 : i32
    %c0_i32_0 = arith.constant 0 : i32
    return %arg0, %c0_i32 : i32, i32
  }
  func.func @transform_18(%arg0: i32) -> (i32, i32) {
    %c0_i32 = arith.constant 0 : i32
    %c0_i32_0 = arith.constant 0 : i32
    return %arg0, %c0_i32 : i32, i32
  }
}

</mosaic_0001>

<bundles_post_ra>
// kernel: autoencoder_forward.1
= control target key start
LH: loop header
LB: loop body
LE: loop exit
PB: predicated region body
PF: predicated region fallthrough
CT: control target
= control target key end

     0   :  { %s3084_s27 = smov 0   ;;  %s3597_s0 = inlined_call_operand.vmem [shape: bf16[48,784], index: 0, kind: input, shape index: {}]   ;;  %s3598_s1 = inlined_call_operand.vmem [shape: bf16[784,128], index: 1, kind: input, shape index: {}]   ;;  %s3599_s2 = inlined_call_operand.vmem [shape: f32[1,128], index: 2, kind: input, shape index: {}]   ;;  %s3600_s3 = inlined_call_operand.vmem [shape: bf16[128,64], index: 3, kind: input, shape index: {}]   ;;  %s3601_s4 = inlined_call_operand.vmem [shape: f32[1,64], index: 4, kind: input, shape index: {}]   ;;  %s3602_s5 = inlined_call_operand.vmem [shape: bf16[64,12], index: 5, kind: input, shape index: {}]   ;;  %s3603_s6 = inlined_call_operand.vmem [shape: f32[1,12], index: 6, kind: input, shape index: {}]   ;;  %s3604_s7 = inlined_call_operand.vmem [shape: bf16[12,3], index: 7, kind: input, shape index: {}]   ;;  %s3605_s8 = inlined_call_operand.vmem [shape: f32[1,3], index: 8, kind: input, shape index: {}]   ;;  %s3606_s9 = inlined_call_operand.vmem [shape: bf16[3,12], index: 9, kind: input, shape index: {}]   ;;  %s3607_s10 = inlined_call_operand.vmem [shape: f32[1,12], index: 10, kind: input, shape index: {}]   ;;  %s3608_s11 = inlined_call_operand.vmem [shape: bf16[12,64], index: 11, kind: input, shape index: {}]   ;;  %s3609_s12 = inlined_call_operand.vmem [shape: f32[1,64], index: 12, kind: input, shape index: {}]   ;;  %s3610_s13 = inlined_call_operand.vmem [shape: bf16[64,128], index: 13, kind: input, shape index: {}]   ;;  %s3611_s14 = inlined_call_operand.vmem [shape: f32[1,128], index: 14, kind: input, shape index: {}]   ;;  %s3612_s15 = inlined_call_operand.vmem [shape: bf16[128,784], index: 15, kind: input, shape index: {}]   ;;  %s3613_s16 = inlined_call_operand.vmem [shape: f32[1,784], index: 16, kind: input, shape index: {}]   ;;  %s3614_s17 = inlined_call_operand.vmem [shape: f32[48,3], index: 17, kind: output, shape index: {0}]   ;;  %s3615_s18 = inlined_call_operand.vmem [shape: bf16[48,784], index: 18, kind: output, shape index: {1}]  }
   0x1   :  { %3617 = sst [smem:[#allocation2_spill]] %s3597_s0 }
   0x2   :  { %3618 = sst [smem:[#allocation3_spill]] %s3598_s1 }
   0x3   :  { %3619 = sst [smem:[#allocation4_spill]] %s3599_s2 }
   0x4 LB: > { %s2427_s28 = sadd.s32 4294967295, %s2983_s27   ;;  %p2431_p0 = scmp.ge.s32.totalorder %s2983_s27, 1  ;;  %s2983_s27 = sphi %s3084_s27, %s29_s27  }
   0x5   : > { %p517_p1 = scmp.lt.s32.totalorder %s2983_s27, 4 }
   0x7   : > { %p518_p2 = pnand %p2431_p0, %p517_p1 }
   0x8   : > { %s3620_s0 = sld [smem:[#allocation3_spill]] (!%p518_p2)  ;;  %s2432_s20 = sshll.u32 (!%p518_p2), %s2427_s28, 1  ;;  %v2985_v38 = vmov (!%p518_p2), 0.0   ;;  %vm2986_vm0 = vmmov (!%p518_p2), 0   ;;  %vm1042_vm1 = vcmask (!%p518_p2), 130048   ;;  %v2853_v57 = vld [vmem:[%s3600_s3] sm:$0xff] (!%p518_p2)  }
   0x9   : > { %521 = sbr.rel (%p518_p2) target bundleno = 1955 (0x7a3), region = 88  ;;  %p579_p3 = scmp.lt.s32.totalorder (!%p518_p2), %s2432_s20, 5  ;;  %v2854_v58 = vld [vmem:[%s3600_s3 + $0x8] sm:$0xff] (!%p518_p2)   ;;  %v2855_v59 = vld [vmem:[%s3600_s3 + $0x10] sm:$0xff] (!%p518_p2)   ;;  %v2856_v60 = vld [vmem:[%s3600_s3 + $0x18] sm:$0xff] (!%p518_p2)   ;;  %vm1365_vm2 = vcmask (!%p518_p2), 523264  }
   0xa   : > { %s3621_s30 = sld [smem:[#allocation2_spill]] (!%p518_p2)  ;;  %v2857_v61 = vld [vmem:[%s3600_s3 + $0x20] sm:$0xff] (!%p518_p2)   ;;  %v2858_v62 = vld [vmem:[%s3600_s3 + $0x28] sm:$0xff] (!%p518_p2)   ;;  %v2859_v63 = vld [vmem:[%s3600_s3 + $0x30] sm:$0xff] (!%p518_p2)   ;;  %s3622_s26 = sld [smem:[#allocation4_spill]] (!%p518_p2)  ;;  %vm1430_vm3 = vcmask (!%p518_p2), 1045504  }
   0xb   : > { %vm1490_vm4 = vcmask (!%p518_p2), 1040384   ;;  %vm1491_vm5 = vcmask (!%p518_p2), 1041408   ;;  %vm1426_vm6 = vcmask (!%p518_p2), 97280   ;;  %vm1475_vm7 = vcmask (!%p518_p2), 23552  }
   0xc   : > { %vm2329_vm8 = vcmask (!%p518_p2), 125952  }
   0xe   : > { %v2794_v0 = vld [vmem:[%s3620_s0 + $0x40] sm:$0xff] (!%p518_p2)   ;;  %v2798_v4 = vld [vmem:[%s3620_s0 + $0x48] sm:$0xff] (!%p518_p2)   ;;  %v2802_v8 = vld [vmem:[%s3620_s0 + $0x50] sm:$0xff] (!%p518_p2)  }
   0xf   : > { %v2795_v1 = vld [vmem:[%s3620_s0] sm:$0xff] (!%p518_p2)   ;;  %2591 = vmatprep.subr.bf16.mxu0 (!%p518_p2), %v2794_v0  ;;  %v2799_v5 = vld [vmem:[%s3620_s0 + $0x8] sm:$0xff] (!%p518_p2)   ;;  %v2803_v9 = vld [vmem:[%s3620_s0 + $0x10] sm:$0xff] (!%p518_p2)  }
  0x10   : > { %v2796_v2 = vld [vmem:[%s3620_s0 + $0xc0] sm:$0xff]   ;;  %2592 = vmatpush3.bf16.msra.mxu0 %v2795_v1  ;;  %v2800_v6 = vld [vmem:[%s3620_s0 + $0xc8] sm:$0xff]   ;;  %v2804_v10 = vld [vmem:[%s3620_s0 + $0xd0] sm:$0xff]   ;;  %s3624_s20 = smov (!%p579_p3, %s2432_s20), 5 }
  0x11   : > { %v2797_v3 = vld [vmem:[%s3620_s0 + $0x80] sm:$0xff]   ;;  %2613 = vmatprep.subr.bf16.mxu1 %v2796_v2  ;;  %2593 = vmatprep.subr.bf16.mxu0 %v2798_v4  ;;  %v2801_v7 = vld [vmem:[%s3620_s0 + $0x88] sm:$0xff]   ;;  %v2805_v11 = vld [vmem:[%s3620_s0 + $0x90] sm:$0xff]   ;;  %s2781_s19 = smul.u32 28, %s3624_s20  ;;  %s2435_s2 = sshll.u32 %s3624_s20, 3 }
  0x12   : > { %2614 = vmatpush3.bf16.msra.mxu1 %v2797_v3  ;;  %v2806_v12 = vld [vmem:[%s3620_s0 + $0x58] sm:$0xff]   ;;  %v2810_v16 = vld [vmem:[%s3620_s0 + $0x60] sm:$0xff]   ;;  %v2814_v20 = vld [vmem:[%s3620_s0 + $0x68] sm:$0xff]  }
  0x13   : > { %2615 = vmatprep.subr.bf16.mxu1 %v2800_v6  ;;  %v2807_v13 = vld [vmem:[%s3620_s0 + $0x18] sm:$0xff]   ;;  %v2811_v17 = vld [vmem:[%s3620_s0 + $0x20] sm:$0xff]   ;;  %v2815_v21 = vld [vmem:[%s3620_s0 + $0x28] sm:$0xff]   ;;  %s3189_s1 = scalar_lea.vmem %s3621_s30, %s2781_s19  ;;  %s3580_s29 = scalar_lea.vmem %s3615_s18, %s2781_s19 }
  0x14   : > { %2594 = vmatpush3.bf16.msra.mxu0 %v2799_v5  ;;  %v2808_v14 = vld [vmem:[%s3620_s0 + $0xd8] sm:$0xff]   ;;  %v2812_v18 = vld [vmem:[%s3620_s0 + $0xe0] sm:$0xff]   ;;  %v2816_v22 = vld [vmem:[%s3620_s0 + $0xe8] sm:$0xff]  }
  0x15   : > { %2595 = vmatprep.subr.bf16.mxu0 %v2802_v8  ;;  %v2809_v15 = vld [vmem:[%s3620_s0 + $0x98] sm:$0xff]   ;;  %v2813_v19 = vld [vmem:[%s3620_s0 + $0xa0] sm:$0xff]   ;;  %v2817_v23 = vld [vmem:[%s3620_s0 + $0xa8] sm:$0xff]  }
  0x16   : > { %2616 = vmatpush3.bf16.msra.mxu1 %v2801_v7  ;;  %v2818_v24 = vld [vmem:[%s3620_s0 + $0x70] sm:$0xff]   ;;  %v2822_v28 = vld [vmem:[%s3620_s0 + $0x78] sm:$0xff]   ;;  %v2827_v32 = vld [vmem:[%s3189_s1 + $0x4] ss:$28 sps:$4 sm:$0xff]  }
  0x17   : > { %2617 = vmatprep.subr.bf16.mxu1 %v2804_v10  ;;  %v2819_v25 = vld [vmem:[%s3620_s0 + $0x30] sm:$0xff]   ;;  %v2823_v29 = vld [vmem:[%s3620_s0 + $0x38] sm:$0xff]   ;;  %1078 = vmatprep.mubr.bf16.mxu0 %v2827_v32  ;;  %v2829_v34 = vld [vmem:[%s3620_s0 + $0x140] sm:$0xff]  }
  0x18   : > { %2596 = vmatpush3.bf16.msra.mxu0 %v2803_v9  ;;  %v2820_v26 = vld [vmem:[%s3620_s0 + $0xf0] sm:$0xff]   ;;  %v2824_v30 = vld [vmem:[%s3620_s0 + $0xf8] sm:$0xff]   ;;  %v2830_v35 = vld [vmem:[%s3189_s1 + $0x8] ss:$28 sps:$4 sm:$0xff]  }
  0x19   : > { %2597 = vmatprep.subr.bf16.mxu0 %v2806_v12  ;;  %v2821_v27 = vld [vmem:[%s3620_s0 + $0xb0] sm:$0xff]   ;;  %v2825_v31 = vld [vmem:[%s3189_s1] ss:$28 sps:$4 sm:$0xff]   ;;  %v2832_v36 = vld [vmem:[%s3189_s1 + $0xc] ss:$28 sps:$4 sm:$0xff]  }
  0x1a   : > { %2618 = vmatpush3.bf16.msra.mxu1 %v2805_v11  ;;  %v2828_v33 = vld [vmem:[%s3620_s0 + $0xb8] sm:$0xff]   ;;  %v2833_v37 = vld [vmem:[%s3620_s0 + $0x100] sm:$0xff]   ;;  %1119 = vmatprep.mubr.bf16.mxu1 %v2832_v36  ;;  %v2834_v39 = vld [vmem:[%s3620_s0 + $0x148] sm:$0xff]  }
  0x1b   : > { %2619 = vmatprep.subr.bf16.mxu1 %v2808_v14  ;;  %v2835_v40 = vld [vmem:[%s3620_s0 + $0x108] sm:$0xff]   ;;  %v2836_v41 = vld [vmem:[%s3620_s0 + $0x150] sm:$0xff]   ;;  %v2838_v43 = vld [vmem:[%s3620_s0 + $0x158] sm:$0xff]  }
  0x1c   : > { %2598 = vmatpush3.bf16.msra.mxu0 %v2807_v13  ;;  %v2837_v42 = vld [vmem:[%s3620_s0 + $0x110] sm:$0xff]   ;;  %v2839_v44 = vld [vmem:[%s3620_s0 + $0x118] sm:$0xff]   ;;  %v2840_v45 = vld [vmem:[%s3620_s0 + $0x160] sm:$0xff]  }
  0x1d   : > { %2599 = vmatprep.subr.bf16.mxu0 %v2810_v16  ;;  %v2841_v46 = vld [vmem:[%s3620_s0 + $0x120] sm:$0xff]   ;;  %v2842_v47 = vld [vmem:[%s3620_s0 + $0x168] sm:$0xff]   ;;  %v2851_v50 = vld [vmem:[%s3189_s1 + $0x14] ss:$28 sps:$4 sm:$0xff]  }
  0x1e   : > { %2620 = vmatpush3.bf16.msra.mxu1 %v2809_v15  ;;  %v2848_v48 = vld [vmem:[%s3620_s0 + $0x180] sm:$0xff]   ;;  %v2843_v49 = vld [vmem:[%s3620_s0 + $0x128] sm:$0xff]   ;;  %v2844_v51 = vld [vmem:[%s3620_s0 + $0x170] sm:$0xff]  }
  0x1f   : > { %2621 = vmatprep.subr.bf16.mxu1 %v2812_v18  ;;  %v2852_v52 = vld [vmem:[%s3189_s1 + $0x18] ss:$28 sps:$4 sm:$0xff]   ;;  %v2849_v56 = vld [vmem:[%s3189_s1 + $0x10] ss:$28 sps:$4 sm:$0xff]   ;;  %v2438_v2 = vld [vmem:[%s3622_s26] ss:$0 sm:$0xff]  ;;  %s589_s26 = scalar_lea.vmem %s3614_s17, %s2435_s2 }
  0x20   : > { %2600 = vmatpush3.bf16.msra.mxu0 %v2811_v17  ;;  %v2845_v53 = vld [vmem:[%s3620_s0 + $0x130] sm:$0xff]   ;;  %v2846_v54 = vld [vmem:[%s3620_s0 + $0x178] sm:$0xff]  }
  0x21   : > { %2601 = vmatprep.subr.bf16.mxu0 %v2814_v20  ;;  %v2847_v55 = vld [vmem:[%s3620_s0 + $0x138] sm:$0xff]   ;;  %v2863_v36 = vld [vmem:[%s3602_s5 + $0x10] sm:$0xff]  }
  0x22   : > { %2622 = vmatpush3.bf16.msra.mxu1 %v2813_v19  ;;  %v2860_v0 = vld [vmem:[%s3600_s3 + $0x38] sm:$0xff]  }
  0x23   : > { %2623 = vmatprep.subr.bf16.mxu1 %v2816_v22 }
  0x24   : > { %2602 = vmatpush3.bf16.msra.mxu0 %v2815_v21 }
  0x25   : > { %2603 = vmatprep.subr.bf16.mxu0 %v2818_v24 }
  0x26   : > { %2624 = vmatpush3.bf16.msra.mxu1 %v2817_v23 }
  0x27   : > { %2625 = vmatprep.subr.bf16.mxu1 %v2820_v26 }
  0x28   : > { %2604 = vmatpush3.bf16.msra.mxu0 %v2819_v25 }
  0x29   : > { %2605 = vmatprep.subr.bf16.mxu0 %v2822_v28 }
  0x2a   : > { %2626 = vmatpush3.bf16.msra.mxu1 %v2821_v27 }
  0x2b   : > { %2627 = vmatprep.subr.bf16.mxu1 %v2824_v30 }
  0x2c   : > { %2606 = vmatpush3.bf16.msra.mxu0 %v2823_v29 }
  0x2d   : > { %2635 = vmatprep.subr.bf16.mxu0 %v2829_v34  ;;  %v2861_v34 = vld [vmem:[%s3602_s5] sm:$0xff]  }
  0x2e   : > { %2628 = vmatpush3.bf16.msra.mxu1 %v2828_v33 }
  0x2f   : > { %1079 = vmatmul.mubr.bf16.vlgmr.msra.gmra.mrb[0].mxu0 %v2825_v31  ;;  %2693 = vmatprep.subr.bf16.mxu1 %v2985_v38 }
  0x30   : > { %2636 = vmatpush3.bf16.msra.mxu0 %v2833_v37  ;;  %1160 = vmatprep.mubr.bf16.mxu0 %v2851_v50  ;;  %v2864_v37 = vld [vmem:[%s3602_s5 + $0x18] sm:$0xff]   ;;  %v2505_v50 = vld [vmem:[%s3603_s6] ss:$0 sm:$0xff] }
  0x31   : > { %1120 = vmatmul.mubr.bf16.vlgmr.msra.gmra.mrb[0].mxu1 %v2830_v35  ;;  %2637 = vmatprep.subr.bf16.mxu0 %v2834_v39  ;;  %v2862_v35 = vld [vmem:[%s3602_s5 + $0x8] sm:$0xff]   ;;  %v2496_v39 = vld [vmem:[%s3601_s4] ss:$0 sm:$0xff] }
  0x32   : > { %2695 = vmatprep.mubr.msk.bf16.mxu1 %vm2986_vm0, %v2985_v38  ;;  %2694 = vmatpush3.bf16.msra.mxu1 %v2848_v48  ;;  %v2865_v48 = vld [vmem:[%s3604_s7] sm:$0x3f]  }
  0x33   : > { %2699 = vmatprep.subr.bf16.mxu1 %v2985_v38 }
  0x34   : > { %2638 = vmatpush3.bf16.msra.mxu0 %v2835_v40 }
  0x35   : > { %2639 = vmatprep.subr.bf16.mxu0 %v2836_v41 }
  0x38   : > { %2640 = vmatpush3.bf16.msra.mxu0 %v2837_v42 }
  0x39   : > { %2641 = vmatprep.subr.bf16.mxu0 %v2838_v43  ;;  %2696 = vmatmul.mubr.msk.bf16.vlgmr.msra.gmra.mrb[4].mxu1 %vm1042_vm1, %v2852_v52 }
  0x3a   : > { %2715 = vmatprep.mubr.msk.bf16.mxu1 %vm2986_vm0, %v2985_v38  ;;  %2700 = vmatpush3.bf16.msra.mxu1 %v2853_v57 }
  0x3b   : > { %2701 = vmatprep.subr.bf16.mxu1 %v2985_v38 }
  0x3c   : > { %2642 = vmatpush3.bf16.msra.mxu0 %v2839_v44 }
  0x3d   : > { %2643 = vmatprep.subr.bf16.mxu0 %v2840_v45 }
  0x3e   : > { %2702 = vmatpush3.bf16.msra.mxu1 %v2854_v58  ;;  %v2987_v58 = vmov 65535  }
  0x3f   : > { %2703 = vmatprep.subr.bf16.mxu1 %v2985_v38 }
  0x40   : > { %2644 = vmatpush3.bf16.msra.mxu0 %v2841_v46 }
  0x41   : > { %2645 = vmatprep.subr.bf16.mxu0 %v2842_v47 }
  0x42   : > { %2704 = vmatpush3.bf16.msra.mxu1 %v2855_v59  ;;  %v1492_v59 = vsel %vm1490_vm4, 4294967295, %v2987_v58  ;;  %v2909_v58 = vld [vmem:[%s3612_s15 + $0x154] ss:$28 sps:$4 sm:$0xff]  }
  0x43   : > { %2705 = vmatprep.subr.bf16.mxu1 %v2985_v38 }
  0x44   : > { %2646 = vmatpush3.bf16.msra.mxu0 %v2843_v49  ;;  %v1432_v49 = vsel %vm1430_vm3, %v2865_v48, 0  ;;  %v2892_v48 = vld [vmem:[%s3612_s15 + $0xb0] ss:$28 sps:$4 sm:$0xff]  }
  0x45   : > { %2647 = vmatprep.subr.bf16.mxu0 %v2844_v51 }
  0x46   : > { %2706 = vmatpush3.bf16.msra.mxu1 %v2856_v60  ;;  %v1479_v60 = vld [vmem:[%s3606_s9] sm:$0x3] }
  0x47   : > { %2707 = vmatprep.subr.bf16.mxu1 %v2985_v38 }
  0x48   : > { %2648 = vmatpush3.bf16.msra.mxu0 %v2845_v53 }
  0x49   : > { %2649 = vmatprep.subr.bf16.mxu0 %v2846_v54 }
  0x4a   : > { %2708 = vmatpush3.bf16.msra.mxu1 %v2857_v61  ;;  %v1493_v61 = vsel %vm1491_vm5, %v1492_v59, 0  ;;  %v2910_v59 = vld [vmem:[%s3612_s15 + $0x158] ss:$28 sps:$4 sm:$0xff]  }
  0x4b   : > { %2709 = vmatprep.subr.bf16.mxu1 %v2985_v38 }
  0x4c   : > { %2650 = vmatpush3.bf16.msra.mxu0 %v2847_v55 }
  0x4d   : > { %2719 = vmatprep.subr.bf16.mxu0 %v2985_v38 }
  0x4e   : > { %2710 = vmatpush3.bf16.msra.mxu1 %v2858_v62  ;;  %v1495_v62 = vand.u32 %v1493_v61, %v1479_v60  ;;  %v2912_v60 = vld [vmem:[%s3612_s15 + $0x15c] ss:$28 sps:$4 sm:$0xff]   ;;  %v2915_v61 = vld [vmem:[%s3612_s15 + $0x18c] ss:$28 sps:$4 sm:$0xff]  }
  0x4f   : > { %1161 = vmatmul.mubr.bf16.vlgmr.msra.gmra.mrb[4].mxu0 %v2849_v56  ;;  %2711 = vmatprep.subr.bf16.mxu1 %v2985_v38 }
  0x50   : > { %2727 = vmatprep.mubr.msk.bf16.mxu0 %vm2986_vm0, %v2985_v38  ;;  %2720 = vmatpush3.bf16.msra.mxu0 %v2861_v34 }
  0x51   : > { %2721 = vmatprep.subr.bf16.mxu0 %v2985_v38 }
  0x52   : > { %2712 = vmatpush3.bf16.msra.mxu1 %v2859_v63 }
  0x53   : > { %2713 = vmatprep.subr.bf16.mxu1 %v2985_v38 }
  0x54   : > { %2722 = vmatpush3.bf16.msra.mxu0 %v2862_v35 }
  0x55   : > { %2723 = vmatprep.subr.bf16.mxu0 %v2985_v38 }
  0x56   : > { %2714 = vmatpush3.bf16.msra.mxu1 %v2860_v0  ;;  %v2511_v0 = vld [vmem:[%s3605_s8] ss:$0 sm:$0xff] }
  0x57   : > { %2731 = vmatprep.subr.bf16.mxu1 %v2985_v38 }
  0x58   : > { %2724 = vmatpush3.bf16.msra.mxu0 %v2863_v36 }
  0x59   : > { %2725 = vmatprep.subr.bf16.mxu0 %v2985_v38 }
  0x5c   : > { %2726 = vmatpush3.bf16.msra.mxu0 %v2864_v37 }
  0x5d   : > { %2749 = vmatprep.subr.bf16.mxu0 %v2985_v38 }
 0x102   : > { %v2607_v1 = vpop.f32.mrb[0].mxu0 }
 0x103   : > { %v2608_v3 = vpop.f32.mrb[1].mxu0 }
 0x104   : > { %v2609_v4 = vadd.f32 %v2608_v3, %v2607_v1  ;;  %v2610_v5 = vpop.f32.mrb[2].mxu0  ;;  %v2629_v6 = vpop.f32.mrb[0].mxu1 }
 0x105   : > { %v2611_v7 = vpop.f32.mrb[3].mxu0  ;;  %v2630_v10 = vpop.f32.mrb[1].mxu1 }
 0x106   : > { %v1081_v8 = vadd.f32 %v2609_v4, %v2438_v2  ;;  %v2612_v9 = vadd.f32 %v2611_v7, %v2610_v5  ;;  %v2631_v11 = vadd.f32 %v2630_v10, %v2629_v6  ;;  %v2632_v12 = vpop.f32.mrb[2].mxu1  ;;  %v2514_v10 = vld [vmem:[%s3607_s10] ss:$0 sm:$0xff] }
 0x107   : > { %v2633_v14 = vpop.f32.mrb[3].mxu1 }
 0x108   : > { %v1084_v13 = vadd.f32 %v2612_v9, %v2438_v2  ;;  %v1122_v15 = vadd.f32 %v2631_v11, %v1081_v8  ;;  %v2634_v16 = vadd.f32 %v2633_v14, %v2632_v12  ;;  %v2866_v8 = vld [vmem:[%s3608_s11] sm:$0x3f]  }
 0x109   : > { %v1558_v9 = vsel %vm1430_vm3, %v2866_v8, 0 }
 0x10a   : > { %v1125_v17 = vadd.f32 %v2634_v16, %v1084_v13 }
 0x10c   : > { %v1203_v18 = vpop.f32.mrb[4].mxu1 }
 0x10d   : > { %v2697_v19 = vpop.f32.mrb[5].mxu1 }
 0x10e   : > { %v1206_v20 = vpop.f32.mrb[6].mxu1  ;;  %v2867_v19 = vld [vmem:[%s3610_s13] sm:$0xff]  }
 0x10f   : > { %v2698_v21 = vpop.f32.mrb[7].mxu1 }
 0x110   : > { %v2869_v21 = vld [vmem:[%s3610_s13 + $0x10] sm:$0xff]  }
 0x122   : > { %v2651_v22 = vpop.f32.mrb[4].mxu0 }
 0x123   : > { %v2652_v23 = vpop.f32.mrb[5].mxu0 }
 0x124   : > { %v2653_v24 = vadd.f32 %v2652_v23, %v2651_v22  ;;  %v2654_v25 = vpop.f32.mrb[6].mxu0  ;;  %v2870_v22 = vld [vmem:[%s3610_s13 + $0x18] sm:$0xff]  }
 0x125   : > { %v2655_v26 = vpop.f32.mrb[7].mxu0  ;;  %v2871_v23 = vld [vmem:[%s3612_s15] ss:$28 sps:$4 sm:$0xff]  }
 0x126   : > { %v1163_v27 = vadd.f32 %v2653_v24, %v1122_v15  ;;  %v2656_v28 = vadd.f32 %v2655_v26, %v2654_v25  ;;  %v2873_v24 = vld [vmem:[%s3612_s15 + $0x4] ss:$28 sps:$4 sm:$0xff]   ;;  %v2876_v25 = vld [vmem:[%s3612_s15 + $0xc] ss:$28 sps:$4 sm:$0xff]   ;;  %v2879_v26 = vld [vmem:[%s3612_s15 + $0x3c] ss:$28 sps:$4 sm:$0xff]  }
 0x128   : > { %v1204_v29 = vadd.f32 %v1203_v18, %v1163_v27  ;;  %v1166_v30 = vadd.f32 %v2656_v28, %v1125_v17  ;;  %v2877_v27 = vld [vmem:[%s3612_s15 + $0x38] ss:$28 sps:$4 sm:$0xff]  }
 0x129   : > { %v2885_v28 = vld [vmem:[%s3612_s15 + $0x74] ss:$28 sps:$4 sm:$0xff]  }
 0x12a   : > { %v1207_v31 = vadd.f32 %v1206_v20, %v1166_v30  ;;  %v2868_v20 = vld [vmem:[%s3610_s13 + $0x8] sm:$0xff]  }
 0x12b   : > { %v2891_v30 = vld [vmem:[%s3612_s15 + $0xac] ss:$28 sps:$4 sm:$0xff]  }
 0x12c   : > { %v1210_v32 = vpack.c.bf16 %v1207_v31, %v1204_v29  ;;  %v2883_v29 = vld [vmem:[%s3612_s15 + $0x70] ss:$28 sps:$4 sm:$0xff]   ;;  %v2889_v31 = vld [vmem:[%s3612_s15 + $0xa8] ss:$28 sps:$4 sm:$0xff]  }
 0x12e   : > { %2951 = vtanh.bf16 %v1210_v32  ;;  %v2516_v32 = vld [vmem:[%s3609_s12] ss:$0 sm:$0xff] }
 0x139   : > { %v2952_v33 = vpop.eup %2951 }
 0x13a   : > { %2716 = vmatmul.mubr.bf16.vlgmr.msra.gmra.mrb[8].mxu1 %v2952_v33 }
 0x13b   : > { %2733 = vmatprep.mubr.msk.bf16.mxu1 %vm2986_vm0, %v2985_v38  ;;  %2732 = vmatpush3.bf16.msra.mxu1 %v1432_v49  ;;  %v2897_v49 = vld [vmem:[%s3612_s15 + $0xe4] ss:$28 sps:$4 sm:$0xff]  }
 0x13c   : > { %2737 = vmatprep.subr.bf16.mxu1 %v2985_v38 }
 0x20d   : > { %v1317_v40 = vpop.f32.mrb[8].mxu1 }
 0x20e   : > { %v2717_v41 = vpop.f32.mrb[9].mxu1  ;;  %v1318_v43 = vadd.f32 %v2496_v39, %v1317_v40 }
 0x20f   : > { %v1320_v42 = vpop.f32.mrb[10].mxu1  ;;  %v2874_v41 = vld [vmem:[%s3612_s15 + $0x8] ss:$28 sps:$4 sm:$0xff]  }
 0x210   : > { %v1321_v44 = vadd.f32 %v2496_v39, %v1320_v42  ;;  %v2718_v45 = vpop.f32.mrb[11].mxu1  ;;  %v2882_v42 = vld [vmem:[%s3612_s15 + $0x44] ss:$28 sps:$4 sm:$0xff]  }
 0x211   : > { %v2888_v45 = vld [vmem:[%s3612_s15 + $0x7c] ss:$28 sps:$4 sm:$0xff]  }
 0x212   : > { %v1324_v46 = vpack.c.bf16 %v1321_v44, %v1318_v43  ;;  %v2880_v44 = vld [vmem:[%s3612_s15 + $0x40] ss:$28 sps:$4 sm:$0xff]  }
 0x214   : > { %2953 = vtanh.bf16 %v1324_v46  ;;  %v2886_v46 = vld [vmem:[%s3612_s15 + $0x78] ss:$28 sps:$4 sm:$0xff]  }
 0x21f   : > { %v2954_v47 = vpop.eup %2953 }
 0x220   : > { %2728 = vmatmul.mubr.msk.bf16.vlgmr.msra.gmra.mrb[8].mxu0 %vm1365_vm2, %v2954_v47  ;;  %v2894_v47 = vld [vmem:[%s3612_s15 + $0xb4] ss:$28 sps:$4 sm:$0xff]  }
 0x221   : > { %2757 = vmatprep.mubr.msk.bf16.mxu0 %vm2986_vm0, %v2985_v38  ;;  %2750 = vmatpush3.bf16.msra.mxu0 %v2867_v19  ;;  %v2930_v19 = vld [vmem:[%s3612_s15 + $0x88] ss:$28 sps:$4 sm:$0xff]  }
 0x222   : > { %2751 = vmatprep.subr.bf16.mxu0 %v2985_v38 }
 0x225   : > { %2752 = vmatpush3.bf16.msra.mxu0 %v2868_v20  ;;  %v2933_v20 = vld [vmem:[%s3612_s15 + $0xbc] ss:$28 sps:$4 sm:$0xff]  }
 0x226   : > { %2753 = vmatprep.subr.bf16.mxu0 %v2985_v38 }
 0x229   : > { %2754 = vmatpush3.bf16.msra.mxu0 %v2869_v21  ;;  %v2931_v21 = vld [vmem:[%s3612_s15 + $0xb8] ss:$28 sps:$4 sm:$0xff]  }
 0x22a   : > { %2755 = vmatprep.subr.bf16.mxu0 %v2985_v38 }
 0x22d   : > { %2756 = vmatpush3.bf16.msra.mxu0 %v2870_v22  ;;  %v2934_v22 = vld [vmem:[%s3612_s15 + $0xc0] ss:$28 sps:$4 sm:$0xff]  }
 0x22e   : > { %2120 = vmatprep.subr.bf16.mxu0 %v2876_v25  ;;  %v2938_v25 = vld [vmem:[%s3612_s15 + $0xf8] ss:$28 sps:$4 sm:$0xff]  }
 0x2f3   : > { %v1403_v51 = vpop.f32.mrb[8].mxu0 }
 0x2f4   : > { %v2729_v52 = vpop.f32.mrb[9].mxu0  ;;  %v1404_v54 = vadd.f32 %v2505_v50, %v1403_v51  ;;  %v2895_v51 = vld [vmem:[%s3612_s15 + $0xe0] ss:$28 sps:$4 sm:$0xff]  }
 0x2f5   : > { %v1406_v53 = vpop.f32.mrb[10].mxu0  ;;  %v2898_v52 = vld [vmem:[%s3612_s15 + $0xe8] ss:$28 sps:$4 sm:$0xff]  }
 0x2f6   : > { %v1407_v55 = vadd.f32 %v2505_v50, %v1406_v53  ;;  %v2730_v56 = vpop.f32.mrb[11].mxu0  ;;  %v2900_v50 = vld [vmem:[%s3612_s15 + $0xec] ss:$28 sps:$4 sm:$0xff]   ;;  %v2903_v53 = vld [vmem:[%s3612_s15 + $0x11c] ss:$28 sps:$4 sm:$0xff]  }
 0x2f7   : > { %v2904_v56 = vld [vmem:[%s3612_s15 + $0x120] ss:$28 sps:$4 sm:$0xff]  }
 0x2f8   : > { %v1410_v57 = vpack.c.bf16 %v1407_v55, %v1404_v54  ;;  %v2906_v54 = vld [vmem:[%s3612_s15 + $0x124] ss:$28 sps:$4 sm:$0xff]   ;;  %v2901_v55 = vld [vmem:[%s3612_s15 + $0x118] ss:$28 sps:$4 sm:$0xff]  }
 0x2fa   : > { %2955 = vtanh.bf16 %v1410_v57  ;;  %v2907_v57 = vld [vmem:[%s3612_s15 + $0x150] ss:$28 sps:$4 sm:$0xff]  }
 0x305   : > { %v2956_v63 = vpop.eup %2955 }
 0x306   : > { %2734 = vmatmul.mubr.msk.bf16.vlgmr.msra.gmra.mrb[12].mxu1 %vm1426_vm6, %v2956_v63  ;;  %v2988_v63 = vmov 0  }
 0x307   : > { %2738 = vmatpush3.bf16.msra.mxu1 %v1495_v62  ;;  %2739 = vmatprep.mubr.msk.bf16.mxu1 %vm2986_vm0, %v2985_v38  ;;  %v2918_v62 = vld [vmem:[%s3612_s15 + $0x194] ss:$28 sps:$4 sm:$0xff]  }
 0x308   : > { %2743 = vmatprep.subr.bf16.mxu1 %v2985_v38 }
 0x3d9   : > { %v1468_v1 = vpop.f32.mrb[12].mxu1 }
 0x3da   : > { %v1469_v2 = vadd.f32 %v2511_v0, %v1468_v1  ;;  %v2735_v3 = vpop.f32.mrb[13].mxu1  ;;  %v2916_v1 = vld [vmem:[%s3612_s15 + $0x190] ss:$28 sps:$4 sm:$0xff]  }
 0x3db   : > { %v1471_v4 = vpop.f32.mrb[14].mxu1  ;;  %v2519_v3 = vld [vmem:[%s3611_s14] ss:$0 sm:$0xff] }
 0x3dc   : > { %1476 = vst.msk [vmem:[%s589_s26] sm:$0xff] %vm1475_vm7, %v1469_v2  ;;  %v1472_v5 = vadd.f32 %v2511_v0, %v1471_v4  ;;  %v2736_v6 = vpop.f32.mrb[15].mxu1  ;;  %v2913_v0 = vld [vmem:[%s3612_s15 + $0x188] ss:$28 sps:$4 sm:$0xff]  }
 0x3de   : > { %1477 = vst.msk [vmem:[%s589_s26 + $0x8] sm:$0xff] %vm1475_vm7, %v1472_v5  ;;  %v1478_v7 = vpack.c.bf16 %v1472_v5, %v1469_v2  ;;  %v2921_v2 = vld [vmem:[%s3612_s15 + $0x14] ss:$28 sps:$4 sm:$0xff]  }
 0x3e0   : > { %2740 = vmatmul.mubr.msk.bf16.vlgmr.msra.gmra.mrb[16].mxu1 %vm1475_vm7, %v1478_v7 }
 0x3e1   : > { %2745 = vmatprep.mubr.msk.bf16.mxu1 %vm2986_vm0, %v2985_v38  ;;  %2744 = vmatpush3.bf16.msra.mxu1 %v1558_v9 }
 0x3e2   : > { %2077 = vmatprep.subr.bf16.mxu1 %v2873_v24  ;;  %v2935_v24 = vld [vmem:[%s3612_s15 + $0xf0] ss:$28 sps:$4 sm:$0xff]  }
 0x4b3   : > { %v1531_v11 = vpop.f32.mrb[16].mxu1 }
 0x4b4   : > { %v2741_v12 = vpop.f32.mrb[17].mxu1  ;;  %v1532_v14 = vadd.f32 %v2514_v10, %v1531_v11  ;;  %v2919_v11 = vld [vmem:[%s3612_s15 + $0x10] ss:$28 sps:$4 sm:$0xff]  }
 0x4b5   : > { %v1534_v13 = vpop.f32.mrb[18].mxu1  ;;  %v2922_v12 = vld [vmem:[%s3612_s15 + $0x18] ss:$28 sps:$4 sm:$0xff]  }
 0x4b6   : > { %v1535_v15 = vadd.f32 %v2514_v10, %v1534_v13  ;;  %v2742_v16 = vpop.f32.mrb[19].mxu1  ;;  %v2925_v13 = vld [vmem:[%s3612_s15 + $0x4c] ss:$28 sps:$4 sm:$0xff]  }
 0x4b7   : > { %v2926_v16 = vld [vmem:[%s3612_s15 + $0x50] ss:$28 sps:$4 sm:$0xff]  }
 0x4b8   : > { %v1538_v17 = vpack.c.bf16 %v1535_v15, %v1532_v14  ;;  %v2923_v15 = vld [vmem:[%s3612_s15 + $0x48] ss:$28 sps:$4 sm:$0xff]  }
 0x4ba   : > { %2957 = vtanh.bf16 %v1538_v17  ;;  %v2929_v17 = vld [vmem:[%s3612_s15 + $0x84] ss:$28 sps:$4 sm:$0xff]  }
 0x4c5   : > { %v2958_v18 = vpop.eup %2957 }
 0x4c6   : > { %2746 = vmatmul.mubr.msk.bf16.vlgmr.msra.gmra.mrb[20].mxu1 %vm1426_vm6, %v2958_v18  ;;  %v2927_v18 = vld [vmem:[%s3612_s15 + $0x80] ss:$28 sps:$4 sm:$0xff]  }
 0x4c7   : > { %2078 = vmatpush1.bf16.msra.mxu1 %v2871_v23  ;;  %2109 = vmatprep.mubr.bf16.mxu1 %v2988_v63  ;;  %v2937_v23 = vld [vmem:[%s3612_s15 + $0xf4] ss:$28 sps:$4 sm:$0xff]  }
 0x4c8   : > { %2079 = vmatprep.subr.bf16.mxu1 %v2879_v26  ;;  %v2941_v26 = vld [vmem:[%s3612_s15 + $0x12c] ss:$28 sps:$4 sm:$0xff]  }
 0x4cb   : > { %2080 = vmatpush1.bf16.msra.mxu1 %v2877_v27  ;;  %v2939_v27 = vld [vmem:[%s3612_s15 + $0x128] ss:$28 sps:$4 sm:$0xff]  }
 0x4cc   : > { %2081 = vmatprep.subr.bf16.mxu1 %v2885_v28  ;;  %v2942_v28 = vld [vmem:[%s3612_s15 + $0x130] ss:$28 sps:$4 sm:$0xff]  }
 0x4cf   : > { %2082 = vmatpush1.bf16.msra.mxu1 %v2883_v29  ;;  %v2945_v29 = vld [vmem:[%s3612_s15 + $0x164] ss:$28 sps:$4 sm:$0xff]  }
 0x4d0   : > { %2083 = vmatprep.subr.bf16.mxu1 %v2891_v30  ;;  %v2943_v30 = vld [vmem:[%s3612_s15 + $0x160] ss:$28 sps:$4 sm:$0xff]  }
 0x4d3   : > { %2084 = vmatpush1.bf16.msra.mxu1 %v2889_v31  ;;  %v2946_v31 = vld [vmem:[%s3612_s15 + $0x168] ss:$28 sps:$4 sm:$0xff]  }
 0x4d4   : > { %2085 = vmatprep.subr.bf16.mxu1 %v2897_v49 }
 0x4d7   : > { %2086 = vmatpush1.bf16.msra.mxu1 %v2895_v51 }
 0x4d8   : > { %2087 = vmatprep.subr.bf16.mxu1 %v2903_v53 }
 0x4db   : > { %2088 = vmatpush1.bf16.msra.mxu1 %v2901_v55 }
 0x4dc   : > { %2089 = vmatprep.subr.bf16.mxu1 %v2909_v58 }
 0x4df   : > { %2090 = vmatpush1.bf16.msra.mxu1 %v2907_v57 }
 0x4e0   : > { %2091 = vmatprep.subr.bf16.mxu1 %v2915_v61 }
 0x4e3   : > { %2092 = vmatpush1.bf16.msra.mxu1 %v2913_v0 }
 0x4e4   : > { %2163 = vmatprep.subr.bf16.mxu1 %v2921_v2 }
 0x599   : > { %v1594_v33 = vpop.f32.mrb[20].mxu1 }
 0x59a   : > { %v2747_v34 = vpop.f32.mrb[21].mxu1  ;;  %v1595_v36 = vadd.f32 %v2516_v32, %v1594_v33  ;;  %v2947_v33 = vld [vmem:[%s3612_s15 + $0x198] ss:$28 sps:$4 sm:$0xff]  }
 0x59b   : > { %v1597_v35 = vpop.f32.mrb[22].mxu1  ;;  %v2950_v34 = vld [vmem:[%s3612_s15 + $0x1a0] ss:$28 sps:$4 sm:$0xff]  }
 0x59c   : > { %v1598_v37 = vadd.f32 %v2516_v32, %v1597_v35  ;;  %v2748_v39 = vpop.f32.mrb[23].mxu1  ;;  %v2949_v32 = vld [vmem:[%s3612_s15 + $0x19c] ss:$28 sps:$4 sm:$0xff]   ;;  %v1754_v35 = vlaneseq }
 0x59e   : > { %v1601_v40 = vpack.c.bf16 %v1598_v37, %v1595_v36  ;;  %v3558_v36 = vshrl.u32 %v1754_v35, 7 }
 0x5a0   : > { %2959 = vtanh.bf16 %v1601_v40  ;;  %v1756_v37 = vsub.s32 0, %v3558_v36  ;;  %v1764_v39 = vsub.s32 2, %v3558_v36  ;;  %v3565_v40 = vld [vmem:[%s3613_s16] sm:$0x7f] }
 0x5ab   : > { %v2960_v43 = vpop.eup %2959 }
 0x5ac   : > { %2758 = vmatmul.mubr.msk.bf16.vlgmr.msra.gmra.mrb[12].mxu0 %vm1365_vm2, %v2960_v43  ;;  %v1765_v43 = vrot.slane %v3565_v40, %v1764_v39 }
 0x5ad   : > { %2121 = vmatpush1.bf16.msra.mxu0 %v2874_v41  ;;  %2152 = vmatprep.mubr.bf16.mxu0 %v2988_v63  ;;  %v1760_v41 = vsub.s32 1, %v3558_v36 }
 0x5ae   : > { %2122 = vmatprep.subr.bf16.mxu0 %v2882_v42  ;;  %v1757_v42 = vrot.slane %v3565_v40, %v1756_v37 }
 0x5b1   : > { %2123 = vmatpush1.bf16.msra.mxu0 %v2880_v44  ;;  %v1761_v44 = vrot.slane %v3565_v40, %v1760_v41 }
 0x5b2   : > { %2124 = vmatprep.subr.bf16.mxu0 %v2888_v45 }
 0x5b5   : > { %2125 = vmatpush1.bf16.msra.mxu0 %v2886_v46 }
 0x5b6   : > { %2126 = vmatprep.subr.bf16.mxu0 %v2894_v47 }
 0x5b9   : > { %2127 = vmatpush1.bf16.msra.mxu0 %v2892_v48 }
 0x5ba   : > { %2128 = vmatprep.subr.bf16.mxu0 %v2900_v50 }
 0x5bd   : > { %2129 = vmatpush1.bf16.msra.mxu0 %v2898_v52 }
 0x5be   : > { %2130 = vmatprep.subr.bf16.mxu0 %v2906_v54 }
 0x5c1   : > { %2131 = vmatpush1.bf16.msra.mxu0 %v2904_v56 }
 0x5c2   : > { %2132 = vmatprep.subr.bf16.mxu0 %v2912_v60 }
 0x5c5   : > { %2133 = vmatpush1.bf16.msra.mxu0 %v2910_v59 }
 0x5c6   : > { %2134 = vmatprep.subr.bf16.mxu0 %v2918_v62 }
 0x5c9   : > { %2135 = vmatpush1.bf16.msra.mxu0 %v2916_v1 }
 0x5ca   : > { %2761 = vmatprep.subr.bf16.mxu0 %v2985_v38 }
 0x67f   : > { %v1679_v4 = vpop.f32.mrb[12].mxu0 }
 0x680   : > { %v2759_v5 = vpop.f32.mrb[13].mxu0  ;;  %v1680_v7 = vadd.f32 %v2519_v3, %v1679_v4 }
 0x681   : > { %v1682_v6 = vpop.f32.mrb[14].mxu0 }
 0x682   : > { %v1683_v8 = vadd.f32 %v2519_v3, %v1682_v6  ;;  %v2760_v9 = vpop.f32.mrb[15].mxu0 }
 0x684   : > { %v1686_v10 = vpack.c.bf16 %v1683_v8, %v1680_v7 }
 0x686   : > { %2961 = vtanh.bf16 %v1686_v10 }
 0x691   : > { %v2962_v14 = vpop.eup %2961 }
 0x692   : > { %2110 = vmatmul.mubr.bf16.vlgmr.msra.gmra.mrb[24].mxu1 %v2962_v14  ;;  %2153 = vmatmul.mubr.bf16.vlgmr.msra.gmra.mrb[16].mxu0 %v2962_v14 }
 0x693   : > { %2164 = vmatpush1.bf16.msra.mxu1 %v2919_v11  ;;  %2762 = vmatpush3.bf16.msra.mxu0 %v2922_v12 }
 0x694   : > { %2165 = vmatprep.subr.bf16.mxu1 %v2925_v13  ;;  %2763 = vmatprep.subr.bf16.mxu0 %v2985_v38 }
 0x695   : > { %2195 = vmatprep.mubr.bf16.mxu1 %v2988_v63  ;;  %2777 = vmatprep.mubr.msk.bf16.mxu0 %vm2986_vm0, %v2985_v38 }
 0x697   : > { %2166 = vmatpush1.bf16.msra.mxu1 %v2923_v15  ;;  %2764 = vmatpush3.bf16.msra.mxu0 %v2926_v16 }
 0x698   : > { %2167 = vmatprep.subr.bf16.mxu1 %v2929_v17  ;;  %2765 = vmatprep.subr.bf16.mxu0 %v2985_v38 }
 0x69b   : > { %2168 = vmatpush1.bf16.msra.mxu1 %v2927_v18  ;;  %2766 = vmatpush3.bf16.msra.mxu0 %v2930_v19 }
 0x69c   : > { %2169 = vmatprep.subr.bf16.mxu1 %v2933_v20  ;;  %2767 = vmatprep.subr.bf16.mxu0 %v2985_v38 }
 0x69f   : > { %2170 = vmatpush1.bf16.msra.mxu1 %v2931_v21  ;;  %2768 = vmatpush3.bf16.msra.mxu0 %v2934_v22  ;;  %v1772_v21 = vsub.s32 4, %v3558_v36  ;;  %v1780_v22 = vsub.s32 6, %v3558_v36 }
 0x6a0   : > { %2171 = vmatprep.subr.bf16.mxu1 %v2937_v23  ;;  %2769 = vmatprep.subr.bf16.mxu0 %v2985_v38 }
 0x6a3   : > { %2172 = vmatpush1.bf16.msra.mxu1 %v2935_v24  ;;  %2770 = vmatpush3.bf16.msra.mxu0 %v2938_v25  ;;  %v1776_v24 = vsub.s32 5, %v3558_v36 }
 0x6a4   : > { %2173 = vmatprep.subr.bf16.mxu1 %v2941_v26  ;;  %2771 = vmatprep.subr.bf16.mxu0 %v2985_v38 }
 0x6a7   : > { %2174 = vmatpush1.bf16.msra.mxu1 %v2939_v27  ;;  %2772 = vmatpush3.bf16.msra.mxu0 %v2942_v28 }
 0x6a8   : > { %2175 = vmatprep.subr.bf16.mxu1 %v2945_v29  ;;  %2773 = vmatprep.subr.bf16.mxu0 %v2985_v38  ;;  %v1773_v29 = vrot.slane %v3565_v40, %v1772_v21 }
 0x6ab   : > { %2176 = vmatpush1.bf16.msra.mxu1 %v2943_v30  ;;  %2774 = vmatpush3.bf16.msra.mxu0 %v2946_v31  ;;  %v1781_v30 = vrot.slane %v3565_v40, %v1780_v22  ;;  %v1777_v31 = vrot.slane %v3565_v40, %v1776_v24 }
 0x6ac   : > { %2177 = vmatprep.subr.bf16.mxu1 %v2949_v32  ;;  %2775 = vmatprep.subr.bf16.mxu0 %v2985_v38  ;;  %v1768_v38 = vsub.s32 3, %v3558_v36 }
 0x6ae   : > { %v1769_v45 = vrot.slane %v3565_v40, %v1768_v38 }
 0x6af   : > { %2178 = vmatpush1.bf16.msra.mxu1 %v2947_v33  ;;  %2776 = vmatpush3.bf16.msra.mxu0 %v2950_v34 }
 0x6b2   : > { %2196 = vmatmul.mubr.bf16.vlgmr.msra.gmra.mrb[28].mxu1 %v2962_v14  ;;  %2778 = vmatmul.mubr.bf16.vlgmr.msra.gmra.mrb[20].mxu0 %v2962_v14 }
 0x765   : > { %v2111_v46 = vpop.f32.mrb[24].mxu1  ;;  %v2154_v47 = vpop.f32.mrb[16].mxu0 }
 0x766   : > { %v2112_v48 = vadd.f32 %v2111_v46, %v1757_v42  ;;  %v2155_v49 = vadd.f32 %v2154_v47, %v1765_v43  ;;  %v2113_v50 = vpop.f32.mrb[25].mxu1  ;;  %v2156_v51 = vpop.f32.mrb[17].mxu0 }
 0x767   : > { %v2114_v52 = vadd.f32 %v2113_v50, %v1761_v44  ;;  %v2157_v53 = vadd.f32 %v2156_v51, %v1769_v45  ;;  %v2115_v54 = vpop.f32.mrb[26].mxu1  ;;  %v2158_v55 = vpop.f32.mrb[18].mxu0 }
 0x768   : > { %v2116_v56 = vadd.f32 %v2115_v54, %v1757_v42  ;;  %v2159_v57 = vadd.f32 %v2158_v55, %v1765_v43  ;;  %v2117_v58 = vpop.f32.mrb[27].mxu1  ;;  %v2160_v59 = vpop.f32.mrb[19].mxu0  ;;  %v2247_v62 = vmul.f32 0.5, %v2112_v48  ;;  %v2249_v63 = vmul.f32 0.5, %v2155_v49 }
 0x769   : > { %v2118_v60 = vadd.f32 %v2117_v58, %v1761_v44  ;;  %v2161_v61 = vadd.f32 %v2160_v59, %v1769_v45  ;;  %v2248_v2 = vmul.f32 0.5, %v2114_v52  ;;  %v2250_v3 = vmul.f32 0.5, %v2157_v53 }
 0x76a   : > { %v2254_v0 = vmul.f32 0.5, %v2116_v56  ;;  %v2256_v1 = vmul.f32 0.5, %v2159_v57 }
 0x76b   : > { %v2255_v4 = vmul.f32 0.5, %v2118_v60  ;;  %v2257_v5 = vmul.f32 0.5, %v2161_v61 }
 0x76c   : > { %v2261_v6 = vpack.c.bf16 %v2254_v0, %v2247_v62  ;;  %v2263_v7 = vpack.c.bf16 %v2256_v1, %v2249_v63 }
 0x76d   : > { %v2262_v8 = vpack.c.bf16 %v2255_v4, %v2248_v2  ;;  %v2264_v9 = vpack.c.bf16 %v2257_v5, %v2250_v3 }
 0x76e   : > { %2963 = vtanh.bf16 %v2261_v6 }
 0x76f   : > { %2965 = vtanh.bf16 %v2263_v7 }
 0x770   : > { %2967 = vtanh.bf16 %v2262_v8 }
 0x771   : > { %2969 = vtanh.bf16 %v2264_v9 }
 0x779   : > { %v2964_v10 = vpop.eup %2963 }
 0x77a   : > { %v2966_v11 = vpop.eup %2965  ;;  %v2275_v12 = vmul.bf16 1056980736, %v2964_v10 }
 0x77b   : > { %v2968_v13 = vpop.eup %2967  ;;  %v2277_v14 = vmul.bf16 1056980736, %v2966_v11 }
 0x77c   : > { %v2970_v15 = vpop.eup %2969  ;;  %v2282_v16 = vadd.bf16 1056980736, %v2275_v12  ;;  %v2276_v17 = vmul.bf16 1056980736, %v2968_v13 }
 0x77d   : > { %v2284_v18 = vadd.bf16 1056980736, %v2277_v14  ;;  %v2278_v19 = vmul.bf16 1056980736, %v2970_v15 }
 0x77e   : > { %v2283_v20 = vadd.bf16 1056980736, %v2276_v17 }
 0x77f   : > { %v2285_v23 = vadd.bf16 1056980736, %v2278_v19 }
 0x780   : > { %v2581_v25 = vcombine.low %v2282_v16, %v2283_v20  ;;  %v2585_v26 = vcombine.high %v2282_v16, %v2283_v20 }
 0x781   : > { %v2582_v27 = vcombine.low %v2284_v18, %v2285_v23  ;;  %v2586_v28 = vcombine.high %v2284_v18, %v2285_v23 }
 0x782   : > { %2326 = vst [vmem:[%s3580_s29] sm:$0xff] %v2581_v25  ;;  %2331 = vst [vmem:[%s3580_s29 + $0x1c] sm:$0xff] %v2585_v26 }
 0x783   : > { %2327 = vst [vmem:[%s3580_s29 + $0x8] sm:$0xff] %v2582_v27  ;;  %2332 = vst [vmem:[%s3580_s29 + $0x24] sm:$0xff] %v2586_v28 }
 0x785   : > { %v2197_v32 = vpop.f32.mrb[28].mxu1  ;;  %v2240_v33 = vpop.f32.mrb[20].mxu0 }
 0x786   : > { %v2198_v34 = vadd.f32 %v2197_v32, %v1773_v29  ;;  %v2241_v35 = vadd.f32 %v2240_v33, %v1781_v30  ;;  %v2199_v37 = vpop.f32.mrb[29].mxu1  ;;  %v2779_v36 = vpop.f32.mrb[21].mxu0 }
 0x787   : > { %v2200_v39 = vadd.f32 %v2199_v37, %v1777_v31  ;;  %v2201_v41 = vpop.f32.mrb[30].mxu1  ;;  %v2243_v38 = vpop.f32.mrb[22].mxu0 }
 0x788   : > { %v2202_v42 = vadd.f32 %v2201_v41, %v1773_v29  ;;  %v2244_v43 = vadd.f32 %v2243_v38, %v1781_v30  ;;  %v2203_v44 = vpop.f32.mrb[31].mxu1  ;;  %v2780_v45 = vpop.f32.mrb[23].mxu0  ;;  %v2251_v47 = vmul.f32 0.5, %v2198_v34  ;;  %v2253_v48 = vmul.f32 0.5, %v2241_v35 }
 0x789   : > { %v2204_v46 = vadd.f32 %v2203_v44, %v1777_v31  ;;  %v2252_v40 = vmul.f32 0.5, %v2200_v39 }
 0x78a   : > { %v2258_v49 = vmul.f32 0.5, %v2202_v42  ;;  %v2260_v50 = vmul.f32 0.5, %v2244_v43 }
 0x78b   : > { %v2259_v51 = vmul.f32 0.5, %v2204_v46 }
 0x78c   : > { %v2265_v52 = vpack.c.bf16 %v2258_v49, %v2251_v47  ;;  %v2267_v53 = vpack.c.bf16 %v2260_v50, %v2253_v48 }
 0x78d   : > { %v2266_v54 = vpack.c.bf16 %v2259_v51, %v2252_v40 }
 0x78e   : > { %2971 = vtanh.bf16 %v2265_v52 }
 0x78f   : > { %2973 = vtanh.bf16 %v2267_v53 }
 0x790   : > { %2975 = vtanh.bf16 %v2266_v54 }
 0x799   : > { %v2972_v55 = vpop.eup %2971 }
 0x79a   : > { %v2974_v56 = vpop.eup %2973  ;;  %v2279_v57 = vmul.bf16 1056980736, %v2972_v55 }
 0x79b   : > { %v2976_v58 = vpop.eup %2975  ;;  %v2281_v59 = vmul.bf16 1056980736, %v2974_v56 }
 0x79c   : > { %v2286_v60 = vadd.bf16 1056980736, %v2279_v57  ;;  %v2280_v61 = vmul.bf16 1056980736, %v2976_v58 }
 0x79d   : > { %v2288_v62 = vadd.bf16 1056980736, %v2281_v59 }
 0x79e   : > { %v2287_v63 = vadd.bf16 1056980736, %v2280_v61 }
 0x79f   : > { %v2584_v0 = vcombine.low %v2288_v62, %v2288_v62  ;;  %v2588_v1 = vcombine.high %v2288_v62, %v2288_v62 }
 0x7a0   : > { %v2583_v2 = vcombine.low %v2286_v60, %v2287_v63  ;;  %v2587_v3 = vcombine.high %v2286_v60, %v2287_v63 }
 0x7a1   : > { %2330 = vst.msk [vmem:[%s3580_s29 + $0x18] sm:$0xf] %vm2329_vm8, %v2584_v0  ;;  %2334 = vst.msk [vmem:[%s3580_s29 + $0x34] sm:$0xf] %vm2329_vm8, %v2588_v1 }
 0x7a2   : > { %2328 = vst [vmem:[%s3580_s29 + $0x10] sm:$0xff] %v2583_v2  ;;  %2333 = vst [vmem:[%s3580_s29 + $0x2c] sm:$0xff] %v2587_v3 }
 0x7a3 PF: > { %s29_s27 = sadd.s32 1, %s2983_s27  }
 0x7a4   : > { %p26_p4 = scmp.ge.s32.totalorder %s29_s27, 5  }
 0x7a6   :  { %28 = sbr.rel (!%p26_p4) target bundleno = 4 (0x4), region = 130 }

</bundles_post_ra>
